<compile_context>
chip_gen: v5e
topology: v5e:2x2
jax: 0.10.0
libtpu: 0.0.40
codegen_flags: <defaults>
</compile_context>

<pallas_src>
import functools

import jax
import jax.numpy as jnp
from jax.experimental import pallas as pl
from jax.experimental.pallas import tpu as pltpu

_LANE = 128
_TARGET_BLOCK_BYTES = 2 << 20      # ~2 MiB per operand per grid step


def _sublane_multiple(itemsize):
    # f32 -> 8 rows, bf16/f16 -> 16, int8/fp8 -> 32 (sub-32-bit packs along sublanes)
    return max(8, 32 // int(itemsize))


def _exact_plan(total, itemsize):
    """Exact (pad-free) 2D tiling of a flat tensor of `total` elements.

    Returns (rows_total, cols, block_rows) with:
      cols  a multiple of 128 dividing `total`,
      block_rows dividing rows_total and a multiple of the dtype sublane pack
      (or equal to rows_total, which Pallas allows as a full-dim block),
    or None if no lane-dense factorization exists.
    """
    sub = _sublane_multiple(itemsize)
    cols = None
    for c in (512, 384, 256, 128):          # lane-dense, 512 is the measured sweet spot
        if total % c == 0:
            cols = c
            break
    if cols is None:
        return None
    rows_total = total // cols
    if rows_total <= sub:
        return rows_total, cols, rows_total  # tiny tensor: one full block
    target_rows = max(sub, _TARGET_BLOCK_BYTES // (cols * itemsize))
    # Prefer >=2 grid steps so both v7x TensorCores get work.
    cap = min(target_rows, rows_total, max(sub, rows_total // 2))
    # Largest divisor of rows_total that is a multiple of `sub` (perf) or at
    # least of 8 (layout requirement) and <= cap.
    for unit in (sub, 8):
        r = (cap // unit) * unit
        while r >= unit:
            if rows_total % r == 0:
                return rows_total, cols, r
            r -= unit
    # No clean divisor: take the whole thing as one block if it is small enough.
    if rows_total * cols * itemsize <= (8 << 20):
        return rows_total, cols, rows_total
    return None


# ------------------------------- kernels -----------------------------------

def _residual_add_kernel(y_ref, x_ref, o_ref):
    # o = fn(x) + x, fn(x) precomputed outside (general fn).
    o_ref[...] = (y_ref[...] + x_ref[...]).astype(o_ref.dtype)


def _residual_fused_kernel(x_ref, o_ref, *, fn):
    # o = fn(x) + x with an elementwise fn applied per VMEM block.
    x = x_ref[...]
    o_ref[...] = (fn(x) + x).astype(o_ref.dtype)


# ------------------------------- impls --------------------------------------

def _residual_add_impl(y, x, *, alias_y):
    out_shape = x.shape
    out_dtype = jnp.result_type(y.dtype, x.dtype)
    total = x.size
    itemsize = jnp.dtype(out_dtype).itemsize
    rows_total, cols, block_rows = _exact_plan(total, itemsize)

    # Contiguous reshape to a lane-dense 2D view: free (no HBM copy).
    y2 = y.reshape(rows_total, cols)
    x2 = x.reshape(rows_total, cols)
    grid = (rows_total // block_rows,)

    out2 = pl.pallas_call(
        _residual_add_kernel,
        out_shape=jax.ShapeDtypeStruct((rows_total, cols), out_dtype),
        grid_spec=pltpu.PrefetchScalarGridSpec(
            num_scalar_prefetch=0,
            grid=grid,
            in_specs=[
                pl.BlockSpec((block_rows, cols), lambda i: (i, 0)),
                pl.BlockSpec((block_rows, cols), lambda i: (i, 0)),
            ],
            out_specs=pl.BlockSpec((block_rows, cols), lambda i: (i, 0)),
        ),
        compiler_params=pltpu.CompilerParams(
            dimension_semantics=("parallel",),   # split steps across TCs on v7x
        ),
        # y = fn(x) is a dead temporary: reuse its buffer for the output.
        input_output_aliases={0: 0} if alias_y else {},
        cost_estimate=pl.CostEstimate(
            flops=total, transcendentals=0,
            bytes_accessed=3 * total * itemsize),
    )(y2, x2)
    return out2.reshape(out_shape)


def _add_donated(y, x):
    return _residual_add_impl(y, x, alias_y=True)


def _add_plain(y, x):
    return _residual_add_impl(y, x, alias_y=False)


# Donate y so the pallas-level alias does not force a defensive copy of y.
_residual_add_donated = jax.jit(_add_donated, donate_argnums=(0,))
_residual_add_plain = jax.jit(_add_plain)


def _residual_fused_impl(x, fn):
    out_shape = x.shape
    total = x.size
    itemsize = jnp.dtype(x.dtype).itemsize
    rows_total, cols, block_rows = _exact_plan(total, itemsize)
    x2 = x.reshape(rows_total, cols)
    grid = (rows_total // block_rows,)

    out2 = pl.pallas_call(
        functools.partial(_residual_fused_kernel, fn=fn),
        out_shape=jax.ShapeDtypeStruct((rows_total, cols), x.dtype),
        grid_spec=pltpu.PrefetchScalarGridSpec(
            num_scalar_prefetch=0,
            grid=grid,
            in_specs=[pl.BlockSpec((block_rows, cols), lambda i: (i, 0))],
            out_specs=pl.BlockSpec((block_rows, cols), lambda i: (i, 0)),
        ),
        compiler_params=pltpu.CompilerParams(
            dimension_semantics=("parallel",),
        ),
        cost_estimate=pl.CostEstimate(
            flops=2 * total, transcendentals=total,
            bytes_accessed=2 * total * itemsize),
    )(x2)
    return out2.reshape(out_shape)


_residual_fused_pallas = jax.jit(_residual_fused_impl, static_argnums=(1,))


# ------------------------------ public API -----------------------------------

def residual_add(y, x):
    """Skip-connection add y + x as a Pallas streaming kernel."""
    if y.shape != x.shape:
        # Rare for a residual; avoid materializing a broadcast copy in HBM.
        # TODO(synk): express genuine broadcasts via the BlockSpec index_map.
        return y + x
    out_dtype = jnp.result_type(y.dtype, x.dtype)
    if _exact_plan(x.size, jnp.dtype(out_dtype).itemsize) is None:
        # Ragged size with no lane-dense factorization: padding copies would
        # double HBM traffic, so let XLA do the plain fused add instead.
        return y + x
    if y.dtype == out_dtype:
        return _residual_add_donated(y, x)
    return _residual_add_plain(y, x)


def residual(x, fn, *args, use_pallas_add=True, **kwargs):
    """Residual.forward for an arbitrary JAX callable fn: fn(x, ...) + x.

    fn runs as ordinary JAX; the skip-add is the Pallas kernel.  If fn's final
    op can be epilogue-fused by XLA, `use_pallas_add=False` (plain fn(x)+x)
    avoids materializing fn(x) in HBM and may be faster.
    """
    y = fn(x, *args, **kwargs)
    if not use_pallas_add:
        return y + x
    return residual_add(y, x)


def residual_fused_elementwise(x, fn):
    """Residual.forward for an *elementwise* fn, fully fused: fn is applied per
    VMEM block inside the kernel, so fn(x) never touches HBM (2x traffic)."""
    if _exact_plan(x.size, jnp.dtype(x.dtype).itemsize) is None:
        # TODO(synk): ragged sizes fall back to XLA's fused elementwise path.
        return fn(x) + x
    return _residual_fused_pallas(x, fn)


# --------------------------------- demo --------------------------------------

def _demo_fn(v):
    # SiLU / Swish written with plain jnp so it lowers cleanly inside the kernel.
    return v * (1.0 / (1.0 + jnp.exp(-v)))


if __name__ == "__main__":
    key = jax.random.PRNGKey(0)
    N, C, H, W = 2, 4, 16, 16
    x = jax.random.normal(key, (N, C, H, W), dtype=jnp.float32)

    # Residual wraps an arbitrary sub-module; an elementwise nonlinearity
    # stands in for it here.
    out_general = jax.block_until_ready(residual(x, _demo_fn))
    out_fused = jax.block_until_ready(residual_fused_elementwise(x, _demo_fn))

    ref = _demo_fn(x) + x
    assert out_general.shape == x.shape and out_fused.shape == x.shape
    assert jnp.allclose(out_general, ref, atol=1e-5, rtol=1e-5), float(
        jnp.max(jnp.abs(out_general - ref)))
    assert jnp.allclose(out_fused, ref, atol=1e-5, rtol=1e-5), float(
        jnp.max(jnp.abs(out_fused - ref)))
    print("KERNEL_OK")
</pallas_src>

<mosaic_0001>
module attributes {stable_mosaic.version = 11 : i64} {
  func.func @_residual_add_kernel(%arg0: i32, %arg1: memref<4x512xf32, #tpu.memory_space<vmem>>, %arg2: memref<4x512xf32, #tpu.memory_space<vmem>>, %arg3: memref<4x512xf32, #tpu.memory_space<vmem>>) attributes {dimension_semantics = [#tpu.dimension_semantics<parallel>], iteration_bounds = array<i64: 1>, scalar_prefetch = 0 : i64, scratch_operands = 0 : i64, tpu.core_type = #tpu.core_type<tc>, window_params = [{transform_indices = @transform_0, window_bounds = array<i64: 4, 512>}, {transform_indices = @transform_1, window_bounds = array<i64: 4, 512>}, {transform_indices = @transform_2, window_bounds = array<i64: 4, 512>}]} {
    %c0 = arith.constant 0 : index
    %c0_0 = arith.constant 0 : index
    %0 = vector.load %arg1[%c0, %c0_0] : memref<4x512xf32, #tpu.memory_space<vmem>>, vector<4x512xf32>
    %c0_1 = arith.constant 0 : index
    %c0_2 = arith.constant 0 : index
    %1 = vector.load %arg2[%c0_1, %c0_2] : memref<4x512xf32, #tpu.memory_space<vmem>>, vector<4x512xf32>
    %2 = arith.addf %0, %1 : vector<4x512xf32>
    %c0_3 = arith.constant 0 : index
    %c0_4 = arith.constant 0 : index
    %3 = vector.load %arg3[%c0_3, %c0_4] : memref<4x512xf32, #tpu.memory_space<vmem>>, vector<4x512xf32>
    tpu.vector_store %arg3[%c0_3, %c0_4], %2 {strides = array<i32>} : memref<4x512xf32, #tpu.memory_space<vmem>>, vector<4x512xf32>,
    return
  }
  func.func @transform_0(%arg0: i32) -> (i32, i32) {
    %c0_i32 = arith.constant 0 : i32
    %c0_i32_0 = arith.constant 0 : i32
    return %arg0, %c0_i32 : i32, i32
  }
  func.func @transform_1(%arg0: i32) -> (i32, i32) {
    %c0_i32 = arith.constant 0 : i32
    %c0_i32_0 = arith.constant 0 : i32
    return %arg0, %c0_i32 : i32, i32
  }
  func.func @transform_2(%arg0: i32) -> (i32, i32) {
    %c0_i32 = arith.constant 0 : i32
    %c0_i32_0 = arith.constant 0 : i32
    return %arg0, %c0_i32 : i32, i32
  }
}

</mosaic_0001>

<bundles_post_ra>
// kernel: _add_donated.1
= control target key start
LH: loop header
LB: loop body
LE: loop exit
PB: predicated region body
PF: predicated region fallthrough
CT: control target
= control target key end

     0   :  { %s56_s0 = inlined_call_operand.vmem [shape: f32[4,512], index: 0, kind: input, shape index: {}, may-alias: {0,2}]   ;;  %s57_s1 = inlined_call_operand.vmem [shape: f32[4,512], index: 1, kind: input, shape index: {}]   ;;  %s58_s2 = inlined_call_operand.vmem [shape: f32[4,512], index: 2, kind: output, shape index: {}, may-alias: {0,2}]  }
   0x1   :  { %v11_v0 = vld [vmem:[%s56_s0] sm:$0xff]  ;;  %v12_v2 = vld [vmem:[%s56_s0 + $0x8] sm:$0xff] }
   0x2   :  { %v13_v1 = vld [vmem:[%s57_s1] sm:$0xff]  ;;  %v14_v4 = vld [vmem:[%s57_s1 + $0x8] sm:$0xff] }
   0x3   :  { %v15_v3 = vadd.f32 %v13_v1, %v11_v0  ;;  %v16_v5 = vadd.f32 %v14_v4, %v12_v2 }
   0x5   :  { %17 = vst [vmem:[%s58_s2] sm:$0xff] %v15_v3 }
   0x6   :  { %18 = vst [vmem:[%s58_s2 + $0x8] sm:$0xff] %v16_v5 }

</bundles_post_ra>
